<compile_context>
chip_gen: v6e
topology: v6e:2x2x1
jax: 0.10.0
libtpu: 0.0.40
codegen_flags: <defaults>
</compile_context>

<pallas_src>
import jax
import jax.numpy as jnp
from jax.experimental import pallas as pl
from jax.experimental.pallas import tpu as pltpu


def _round_up(x, m):
    return (x + m - 1) // m * m


# --------------------------------------------------------------------------- #
# Kernels
# --------------------------------------------------------------------------- #
def _svlora_kernel_f32out(x_ref, wt_ref, xa_ref, sb_ref, bias_ref, o_ref):
    """f32 output: accumulate directly into the resident output block."""
    k = pl.program_id(2)

    @pl.when(k == 0)
    def _():
        # bias + rank-padded LoRA up-projection initialise the accumulator.
        o_ref[...] = (jnp.dot(xa_ref[...], sb_ref[...],
                              preferred_element_type=jnp.float32)
                      + bias_ref[...])

    # base path: x @ W^T, K-accumulated on the MXU (f32 accumulation).
    o_ref[...] += jnp.dot(x_ref[...], wt_ref[...],
                          preferred_element_type=jnp.float32)


def _svlora_kernel_acc(x_ref, wt_ref, xa_ref, sb_ref, bias_ref, o_ref, acc_ref):
    """Generic output dtype: f32 scratch accumulator, cast+store at the end."""
    k = pl.program_id(2)

    @pl.when(k == 0)
    def _():
        acc_ref[...] = (jnp.dot(xa_ref[...], sb_ref[...],
                                preferred_element_type=jnp.float32)
                        + bias_ref[...])

    acc_ref[...] += jnp.dot(x_ref[...], wt_ref[...],
                            preferred_element_type=jnp.float32)

    @pl.when(k == pl.num_programs(2) - 1)
    def _():
        o_ref[...] = acc_ref[...].astype(o_ref.dtype)


# --------------------------------------------------------------------------- #
# Weight preparation (hoist pad/cast out of the per-call forward path)
# --------------------------------------------------------------------------- #
def prepare_svlora_weights(w_t, bias, lora_A, lora_S, lora_B, *, alpha=0.4,
                           lora_S_global=None, tn=1024, tk=512,
                           compute_dtype=jnp.bfloat16):
    """Pad & cast the weight-side operands once (W is frozen under LoRA).

    w_t:    (K, N)  = original_linear.weight.T
    bias:   (N,) or None
    lora_A: (K, rank); lora_S: (rank,); lora_B: (rank, N)
    """
    K, N = w_t.shape
    rank = lora_A.shape[1]
    scaling = alpha / rank
    if lora_S_global is not None:            # global_s=True path of the module
        lora_S = lora_S + lora_S_global
    if bias is None:
        bias = jnp.zeros((N,), jnp.float32)

    mat_dtype = jnp.dtype(compute_dtype)
    tn = min(tn, _round_up(N, 128))
    tk = min(tk, _round_up(K, 128))
    Np, Kp = _round_up(N, tn), _round_up(K, tk)
    Rp = _round_up(max(rank, 128), 128)      # lane-dense rank padding

    wt_p = jnp.pad(w_t, ((0, Kp - K), (0, Np - N))).astype(mat_dtype)
    SB = (lora_S.reshape(rank, 1).astype(jnp.float32)
          * lora_B.astype(jnp.float32)) * scaling
    sb_p = jnp.pad(SB, ((0, Rp - rank), (0, Np - N)))            # f32 (Rp, Np)
    bias_p = jnp.pad(bias.reshape(1, N).astype(jnp.float32),
                     ((0, 0), (0, Np - N)))                      # f32 (1, Np)

    return dict(wt_p=wt_p, sb_p=sb_p, bias_p=bias_p, lora_A=lora_A,
                K=K, N=N, rank=rank, tn=tn, tk=tk, Rp=Rp, mat_dtype=mat_dtype)


# --------------------------------------------------------------------------- #
# Forward
# --------------------------------------------------------------------------- #
def svlora_apply(x, prepared, *, tm=512, out_dtype=None,
                 w_tile_buffers=2, vmem_limit_bytes=48 * 1024 * 1024):
    """y = x @ W^T + bias + (x A diag(S) B) * alpha/rank via the Pallas kernel."""
    K, N = prepared["K"], prepared["N"]
    tn, tk, Rp = prepared["tn"], prepared["tk"], prepared["Rp"]
    mat_dtype = prepared["mat_dtype"]
    wt_p, sb_p, bias_p = prepared["wt_p"], prepared["sb_p"], prepared["bias_p"]
    Kp, Np = wt_p.shape

    lead = x.shape[:-1]
    x2 = x.reshape(-1, x.shape[-1])
    M = x2.shape[0]
    assert x2.shape[1] == K, "in_features mismatch"
    out_dtype = jnp.dtype(out_dtype) if out_dtype is not None else x.dtype

    # Clamp tiles to the (padded) problem; keep >= 2 tiles on the parallel grid
    # axes when possible so v7x's two TensorCores both get work.
    tm = min(tm, _round_up(M, 8))
    while pl.cdiv(M, tm) * (Np // tn) < 2:
        new_tn = tn // 2
        if new_tn >= 128 and new_tn % 128 == 0 and Np % new_tn == 0:
            tn = new_tn
        elif tm > 8:
            tm = max(8, _round_up(tm // 2, 8))
        else:
            break
    Mp = _round_up(M, tm)

    # LoRA down-projection in x's native dtype (f32 accumulate); tiny FLOPs,
    # avoids materialising an f32 copy of the whole activation.
    xA = jnp.dot(x2, prepared["lora_A"].astype(x2.dtype),
                 preferred_element_type=jnp.float32)

    x_p = jnp.pad(x2, ((0, Mp - M), (0, Kp - K))).astype(mat_dtype)
    xa_p = jnp.pad(xA, ((0, Mp - M), (0, Rp - xA.shape[1])))     # f32 (Mp, Rp)

    grid = (Mp // tm, Np // tn, Kp // tk)

    wt_spec_kwargs = {}
    if w_tile_buffers != 2:
        # Deeper buffering on the largest per-step stream (opt-in; costs VMEM).
        wt_spec_kwargs["pipeline_mode"] = pl.Buffered(w_tile_buffers)

    in_specs = [
        pl.BlockSpec((tm, tk), lambda i, j, k: (i, k)),                    # x
        pl.BlockSpec((tk, tn), lambda i, j, k: (k, j), **wt_spec_kwargs),  # W^T
        pl.BlockSpec((tm, Rp), lambda i, j, k: (i, 0)),                    # x @ A
        pl.BlockSpec((Rp, tn), lambda i, j, k: (0, j)),                    # (S*B)*scale
        pl.BlockSpec((1, tn), lambda i, j, k: (0, j)),                     # bias
    ]
    out_spec = pl.BlockSpec((tm, tn), lambda i, j, k: (i, j))

    if out_dtype == jnp.float32:
        kernel, scratch = _svlora_kernel_f32out, []
    else:
        kernel, scratch = _svlora_kernel_acc, [pltpu.VMEM((tm, tn), jnp.float32)]

    # Advisory only (accounts for x / W re-reads across the j / i grid axes).
    flops = 2 * Mp * Np * Kp + 2 * Mp * Rp * Np
    bytes_accessed = (x_p.nbytes * (Np // tn) + wt_p.nbytes * (Mp // tm)
                      + xa_p.nbytes * (Np // tn) + sb_p.nbytes * (Mp // tm)
                      + bias_p.nbytes * (Mp // tm)
                      + Mp * Np * out_dtype.itemsize)

    out_p = pl.pallas_call(
        kernel,
        out_shape=jax.ShapeDtypeStruct((Mp, Np), out_dtype),
        grid_spec=pltpu.PrefetchScalarGridSpec(
            num_scalar_prefetch=0,
            grid=grid,
            in_specs=in_specs,
            out_specs=out_spec,
            scratch_shapes=scratch,
        ),
        compiler_params=pltpu.CompilerParams(
            dimension_semantics=("parallel", "parallel", "arbitrary"),
            vmem_limit_bytes=vmem_limit_bytes),
        cost_estimate=pl.CostEstimate(flops=flops, transcendentals=0,
                                      bytes_accessed=bytes_accessed),
    )(x_p, wt_p, xa_p, sb_p, bias_p)

    return out_p[:M, :N].reshape(*lead, N)


def svlora_linear(x, w_t, bias, lora_A, lora_S, lora_B, *, alpha=0.4,
                  lora_S_global=None, tm=512, tn=1024, tk=512,
                  compute_dtype=jnp.bfloat16, out_dtype=None,
                  w_tile_buffers=2, vmem_limit_bytes=48 * 1024 * 1024):
    """Convenience one-shot wrapper.

    NOTE: in a real training/serving loop call prepare_svlora_weights() once
    and reuse the result across forward calls -- the weight pad/cast was
    hoisted there precisely so it is not paid on every forward.
    """
    prepared = prepare_svlora_weights(
        w_t, bias, lora_A, lora_S, lora_B, alpha=alpha,
        lora_S_global=lora_S_global, tn=tn, tk=tk, compute_dtype=compute_dtype)
    return svlora_apply(x, prepared, tm=tm, out_dtype=out_dtype,
                        w_tile_buffers=w_tile_buffers,
                        vmem_limit_bytes=vmem_limit_bytes)


# --------------------------------------------------------------------------- #
# Reference + tests
# --------------------------------------------------------------------------- #
def _reference(x, W, bias, lora_A, lora_S, lora_B, alpha, lora_S_global=None):
    rank = lora_A.shape[1]
    scaling = alpha / rank
    S = lora_S if lora_S_global is None else lora_S + lora_S_global
    y = x @ W.T + (bias[None, :] if bias is not None else 0.0)
    return y + (x @ lora_A @ jnp.diag(S) @ lora_B) * scaling


if __name__ == "__main__":
    key = jax.random.PRNGKey(0)
    rank, alpha = 4, 0.4

    # ---- Test 1: small shapes, f32 parity path ----------------------------
    batch, in_features, out_features = 8, 128, 256
    kx, kw, kb, ka, kB = jax.random.split(key, 5)
    x = jax.random.normal(kx, (batch, in_features), dtype=jnp.float32)
    W = jax.random.normal(kw, (out_features, in_features), dtype=jnp.float32) * 0.05
    bias = jax.random.normal(kb, (out_features,), dtype=jnp.float32) * 0.1
    # lora_A is zero-init in the module; use small random values so the LoRA
    # path is exercised.  lora_S = linspace(1, 0.1, rank), lora_B ~ normal.
    lora_A = jax.random.normal(ka, (in_features, rank), dtype=jnp.float32) * 0.02
    lora_S = jnp.linspace(1.0, 0.1, rank, dtype=jnp.float32)
    lora_B = jax.random.normal(kB, (rank, out_features), dtype=jnp.float32)

    out = svlora_linear(x, W.T, bias, lora_A, lora_S, lora_B, alpha=alpha,
                        compute_dtype=jnp.float32)
    out = jax.block_until_ready(out)
    ref = _reference(x, W, bias, lora_A, lora_S, lora_B, alpha)
    assert jnp.allclose(out, ref, rtol=5e-4, atol=5e-4), "mismatch (test 1, f32)"

    # ---- Test 2: non-tile-divisible shapes + multi-tile grid (padding &
    #              K-accumulation paths), prepared-weights API ---------------
    M2, K2d, N2 = 24, 256, 384
    kx2, kw2, kb2, ka2, kB2 = jax.random.split(jax.random.PRNGKey(1), 5)
    x2 = jax.random.normal(kx2, (M2, K2d), dtype=jnp.float32)
    W2 = jax.random.normal(kw2, (N2, K2d), dtype=jnp.float32) * 0.05
    b2 = jax.random.normal(kb2, (N2,), dtype=jnp.float32) * 0.1
    A2 = jax.random.normal(ka2, (K2d, rank), dtype=jnp.float32) * 0.02
    S2 = jnp.linspace(1.0, 0.1, rank, dtype=jnp.float32)
    B2 = jax.random.normal(kB2, (rank, N2), dtype=jnp.float32)

    prep2 = prepare_svlora_weights(W2.T, b2, A2, S2, B2, alpha=alpha,
                                   tn=128, tk=128, compute_dtype=jnp.float32)
    out2 = jax.block_until_ready(svlora_apply(x2, prep2, tm=16))
    ref2 = _reference(x2, W2, b2, A2, S2, B2, alpha)
    assert jnp.allclose(out2, ref2, rtol=5e-4, atol=5e-4), "mismatch (test 2, f32)"

    # ---- Test 3: default bf16 compute path + global_s ----------------------
    lora_S_global = jnp.linspace(1.0, 0.1, rank, dtype=jnp.float32)
    out3 = svlora_linear(x, W.T, bias, lora_A, lora_S, lora_B, alpha=alpha,
                         lora_S_global=lora_S_global)     # bf16 by default
    out3 = jax.block_until_ready(out3)
    ref3 = _reference(x, W, bias, lora_A, lora_S, lora_B, alpha,
                      lora_S_global=lora_S_global)
    assert jnp.allclose(out3, ref3, rtol=3e-2, atol=3e-2), "mismatch (test 3, bf16)"

    # ---- Test 4: bf16 activations, 3-D input, non-f32 output
    #              (exercises the scratch-accumulator kernel) ----------------
    x4 = jax.random.normal(jax.random.PRNGKey(2), (2, 8, in_features),
                           dtype=jnp.bfloat16)
    out4 = svlora_linear(x4, W.T, bias, lora_A, lora_S, lora_B, alpha=alpha)
    out4 = jax.block_until_ready(out4)
    assert out4.shape == (2, 8, out_features) and out4.dtype == jnp.bfloat16
    ref4 = _reference(x4.reshape(-1, in_features).astype(jnp.float32),
                      W, bias, lora_A, lora_S, lora_B,
                      alpha).reshape(2, 8, out_features)
    assert jnp.allclose(out4.astype(jnp.float32), ref4,
                        rtol=5e-2, atol=5e-2), "mismatch (test 4, bf16 out)"

    print("KERNEL_OK")
</pallas_src>

<mosaic_0001>
module attributes {stable_mosaic.version = 11 : i64} {
  func.func @_svlora_kernel_f32out(%arg0: i32, %arg1: i32, %arg2: i32, %arg3: memref<8x128xf32, #tpu.memory_space<vmem>>, %arg4: memref<128x128xf32, #tpu.memory_space<vmem>>, %arg5: memref<8x128xf32, #tpu.memory_space<vmem>>, %arg6: memref<128x128xf32, #tpu.memory_space<vmem>>, %arg7: memref<1x128xf32, #tpu.memory_space<vmem>>, %arg8: memref<8x128xf32, #tpu.memory_space<vmem>>) attributes {dimension_semantics = [#tpu.dimension_semantics<parallel>, #tpu.dimension_semantics<parallel>, #tpu.dimension_semantics<arbitrary>], iteration_bounds = array<i64: 1, 2, 1>, scalar_prefetch = 0 : i64, scratch_operands = 0 : i64, tpu.core_type = #tpu.core_type<tc>, window_params = [{transform_indices = @transform_0, window_bounds = array<i64: 8, 128>}, {transform_indices = @transform_1, window_bounds = array<i64: 128, 128>}, {transform_indices = @transform_2, window_bounds = array<i64: 8, 128>}, {transform_indices = @transform_3, window_bounds = array<i64: 128, 128>}, {transform_indices = @transform_4, window_bounds = array<i64: 1, 128>}, {transform_indices = @transform_5, window_bounds = array<i64: 8, 128>}]} {
    %c0_i32 = arith.constant 0 : i32
    %0 = arith.cmpi eq, %arg2, %c0_i32 : i32
    %1 = arith.extui %0 : i1 to i32
    %c0_i32_0 = arith.constant 0 : i32
    %2 = arith.cmpi ne, %1, %c0_i32_0 : i32
    scf.if %2 {
      %c0_8 = arith.constant 0 : index
      %c0_9 = arith.constant 0 : index
      %9 = vector.load %arg5[%c0_8, %c0_9] : memref<8x128xf32, #tpu.memory_space<vmem>>, vector<8x128xf32>
      %c0_10 = arith.constant 0 : index
      %c0_11 = arith.constant 0 : index
      %10 = vector.load %arg6[%c0_10, %c0_11] : memref<128x128xf32, #tpu.memory_space<vmem>>, vector<128x128xf32>
      %cst_12 = arith.constant dense<0.000000e+00> : vector<8x128xf32>
      %11 = tpu.matmul %9, %10, %cst_12 {dimension_numbers = #tpu.dot_dimension_numbers<[1], [0], [0], [1], [0, 0, 1, 1], [], []>} : vector<8x128xf32>, vector<128x128xf32>, vector<8x128xf32> -> vector<8x128xf32>
      %c0_13 = arith.constant 0 : index
      %c0_14 = arith.constant 0 : index
      %12 = vector.load %arg7[%c0_13, %c0_14] : memref<1x128xf32, #tpu.memory_space<vmem>>, vector<1x128xf32>
      %13 = vector.broadcast %12 : vector<1x128xf32> to vector<8x128xf32>
      %14 = arith.addf %11, %13 : vector<8x128xf32>
      %c0_15 = arith.constant 0 : index
      %c0_16 = arith.constant 0 : index
      %15 = vector.load %arg8[%c0_15, %c0_16] : memref<8x128xf32, #tpu.memory_space<vmem>>, vector<8x128xf32>
      tpu.vector_store %arg8[%c0_15, %c0_16], %14 {strides = array<i32>} : memref<8x128xf32, #tpu.memory_space<vmem>>, vector<8x128xf32>,
    } else {
    }
    %c0 = arith.constant 0 : index
    %c0_1 = arith.constant 0 : index
    %3 = vector.load %arg8[%c0, %c0_1] : memref<8x128xf32, #tpu.memory_space<vmem>>, vector<8x128xf32>
    %c0_2 = arith.constant 0 : index
    %c0_3 = arith.constant 0 : index
    %4 = vector.load %arg3[%c0_2, %c0_3] : memref<8x128xf32, #tpu.memory_space<vmem>>, vector<8x128xf32>
    %c0_4 = arith.constant 0 : index
    %c0_5 = arith.constant 0 : index
    %5 = vector.load %arg4[%c0_4, %c0_5] : memref<128x128xf32, #tpu.memory_space<vmem>>, vector<128x128xf32>
    %cst = arith.constant dense<0.000000e+00> : vector<8x128xf32>
    %6 = tpu.matmul %4, %5, %cst {dimension_numbers = #tpu.dot_dimension_numbers<[1], [0], [0], [1], [0, 0, 1, 1], [], []>} : vector<8x128xf32>, vector<128x128xf32>, vector<8x128xf32> -> vector<8x128xf32>
    %7 = arith.addf %3, %6 : vector<8x128xf32>
    %c0_6 = arith.constant 0 : index
    %c0_7 = arith.constant 0 : index
    %8 = vector.load %arg8[%c0_6, %c0_7] : memref<8x128xf32, #tpu.memory_space<vmem>>, vector<8x128xf32>
    tpu.vector_store %arg8[%c0_6, %c0_7], %7 {strides = array<i32>} : memref<8x128xf32, #tpu.memory_space<vmem>>, vector<8x128xf32>,
    return
  }
  func.func @transform_0(%arg0: i32, %arg1: i32, %arg2: i32) -> (i32, i32) {
    %c0_i32 = arith.constant 0 : i32
    return %arg0, %arg2 : i32, i32
  }
  func.func @transform_1(%arg0: i32, %arg1: i32, %arg2: i32) -> (i32, i32) {
    %c0_i32 = arith.constant 0 : i32
    return %arg2, %arg1 : i32, i32
  }
  func.func @transform_2(%arg0: i32, %arg1: i32, %arg2: i32) -> (i32, i32) {
    %c0_i32 = arith.constant 0 : i32
    %c0_i32_0 = arith.constant 0 : i32
    return %arg0, %c0_i32 : i32, i32
  }
  func.func @transform_3(%arg0: i32, %arg1: i32, %arg2: i32) -> (i32, i32) {
    %c0_i32 = arith.constant 0 : i32
    %c0_i32_0 = arith.constant 0 : i32
    return %c0_i32, %arg1 : i32, i32
  }
  func.func @transform_4(%arg0: i32, %arg1: i32, %arg2: i32) -> (i32, i32) {
    %c0_i32 = arith.constant 0 : i32
    %c0_i32_0 = arith.constant 0 : i32
    return %c0_i32, %arg1 : i32, i32
  }
  func.func @transform_5(%arg0: i32, %arg1: i32, %arg2: i32) -> (i32, i32) {
    %c0_i32 = arith.constant 0 : i32
    return %arg0, %arg1 : i32, i32
  }
}

</mosaic_0001>

<bundles_post_ra>
// kernel: tpu_custom_call.1
= control target key start
LH: loop header
LB: loop body
LE: loop exit
PB: predicated region body
PF: predicated region fallthrough
CT: control target
= control target key end

     0   :  { %s1458_s0 = inlined_call_operand.hbm [shape: f32[8,128], index: 0, kind: input, shape index: {}]   ;;  %s1459_s1 = inlined_call_operand.hbm [shape: f32[128,256], index: 1, kind: input, shape index: {}]   ;;  %s1460_s2 = inlined_call_operand.hbm [shape: f32[8,128], index: 2, kind: input, shape index: {}]   ;;  %s1461_s3 = inlined_call_operand.hbm [shape: f32[128,256], index: 3, kind: input, shape index: {}]   ;;  %s1462_s4 = inlined_call_operand.vmem [shape: f32[1,256], index: 4, kind: input, shape index: {}]   ;;  %s1463_s5 = inlined_call_operand.hbm [shape: f32[8,256], index: 5, kind: output, shape index: {}]  }
   0x1   :  { %1475 = sst [smem:[#allocation20_spill]] %s1458_s0 }
   0x2   :  { %1476 = sst [smem:[#allocation21_spill]] %s1459_s1 }
   0x3   :  { %1477 = sst [smem:[#allocation22_spill]] %s1460_s2 }
   0x4   :  { %10 = vsyncpa [#allocation3], 0 }
   0x5   :  { %11 = vsyncpa [#allocation6], 0 }
   0x6   :  { %13 = vsyncpa [#allocation6 + $0x1], 0 }
   0x7   :  { %14 = vsyncpa [#allocation9], 0 }
   0x8   :  { %16 = vsyncpa [#allocation9 + $0x1], 0 }
   0x9   :  { %17 = vsyncpa [#allocation4], 0 }
   0xa   :  { %19 = vsyncpa [#allocation4 + $0x1], 0  ;;  %s1172_s18 = smov 0   ;;  %s1174_s19 = smov 0  }
   0xb   :  { %s1176_s20 = smov 0   ;;  %s1178_s21 = smov 0  }
   0xc   :  { %s1180_s22 = smov 0   ;;  %s1182_s23 = smov 0  }
   0xd LB: > { %1478 = sst [smem:[#allocation16_spill]] %s1130_s23  ;;  %s1203_s24 = sadd.s32 4294967295, %s1130_s23   ;;  %s1130_s23 = sphi %s1182_s23, %s25_s23   ;;  %s1126_s22 = sphi %s1180_s22, %s1512_s22   ;;  %s1122_s21 = sphi %s1178_s21, %s1511_s21   ;;  %s1118_s20 = sphi %s1176_s20, %s1510_s20   ;;  %s1114_s19 = sphi %s1174_s19, %s1509_s19   ;;  %s1110_s18 = sphi %s1172_s18, %s1508_s18  }
   0xe   : > { %s713_s25 = sadd.s32 4294967294, %s1130_s23   ;;  %s81_s26 = sadd.s32 1, %s1118_s20 }
   0xf   : > { %p88_p0 = scmp.ne.s32.totalorder %s1118_s20, %s1114_s19  ;;  %p89_p1 = scmp.eq.s32.totalorder %s1130_s23, 0 }
  0x10   : > { %p94_p2 = scmp.ne.s32.totalorder %s1114_s19, %s1110_s18  ;;  %p1464_p3 = scmp.eq.s32.totalorder %s1203_s24, 0 }
  0x11   : > { %p198_p4 = scmp.eq.s32.totalorder %s1203_s24, 1  ;;  %p1214_p5 = por %p89_p1, %p88_p0 }
  0x12   : > { %p204_p6 = scmp.eq.s32.totalorder %s713_s25, 1  ;;  %p1220_p7 = por %p1464_p3, %p94_p2 }
  0x13   : > { %p1224_p8 = por %p198_p4, %p88_p0  ;;  %p714_p10 = scmp.ge.s32.totalorder %s1130_s23, 1 }
  0x14   : > { %s1480_s28 = scalar_select %p1220_p7, 1, 0 }
  0x15   : > { %s1481_s29 = scalar_select %p1224_p8, 1, 0 }
  0x16   : > { %p1228_p9 = por %p204_p6, %p94_p2  ;;  %p211_p11 = scmp.lt.s32.totalorder %s1130_s23, 3 }
  0x17   : > { %s1132_s7 = smov [#allocation7]   ;;  %p871_p1 = scmp.lt.s32.totalorder %s1130_s23, 2 }
  0x18   : > { %s1482_s30 = scalar_select %p1228_p9, 1, 0 }
  0x19   : > { %p1235_p13 = pnand %p714_p10, %p211_p11  ;;  %s240_s8 = sshll.u32 %s1132_s7, 4  ;;  %s241_s8 = int_to_ptr.vmem [resolvable:$true] %s240_s8 }
  0x1a   : > { %1483 = sst [smem:[#allocation17_spill]] %s1482_s30  ;;  %p1244_p4 = pnand %p871_p1, %p1214_p5 }
  0x1b   : > { %s1484_s6 = scalar_select %p1235_p13, 1, 0 }
  0x1c   : > { %p851_p0 = pneg %p1235_p13  ;;  %s1133_s11 = smov [#allocation2]  }
  0x1d   : > { %s1485_s9 = scalar_select %p1244_p4, 1, 0 }
  0x1e   : > { %p1250_p2 = pnand %p851_p0, %p1464_p3  ;;  %s227_s12 = sshll.u32 %s1133_s11, 4  ;;  %s228_s12 = int_to_ptr.vmem [resolvable:$true] %s227_s12 }
  0x1f   : > { %s941_s13 = scalar_lea.vmem %s241_s8, 128  ;;  %p949_p1 = scmp.lt.s32.totalorder %s241_s8, %s241_s8 }
  0x20   : > { %p932_p6 = pneg %p1250_p2  ;;  %p942_p10 = scmp.ne.s32.totalorder %s241_s8, %s941_s13 }
  0x21   : > { %p950_p12 = scmp.lt.s32.totalorder %s941_s13, %s941_s13 }
  0x22   : > { %p944_p5 = pnand %p942_p10, %p932_p6 }
  0x23   : > { %p951_p9 = por %p950_p12, %p949_p1 }
  0x24   : > { %p945_p11 = pneg %p944_p5 }
  0x26   : > { %p952_p0 = pnand %p951_p9, %p945_p11 }
  0x28   : > { %955 = shalt.err (!%p952_p0)
}
  0x29   : > { %s1487_s2 = sld [smem:[#allocation22_spill]]  ;;  %s967_s16 = scalar_lea.vmem %s228_s12, 128 }
  0x2a   : > { %p968_p3 = scmp.ne.s32.totalorder %s228_s12, %s967_s16  ;;  %p975_p10 = scmp.lt.s32.totalorder %s228_s12, %s228_s12 }
  0x2b   : > { %p976_p5 = scmp.lt.s32.totalorder %s967_s16, %s967_s16 }
  0x2c   : > { %p970_p8 = pnand %p968_p3, %p932_p6 }
  0x2d   : > { %p977_p13 = por %p976_p5, %p975_p10 }
  0x2e   : > { %p971_p7 = pneg %p970_p8 }
  0x2f   : > { %857 = dma.hbm_to_vmem [thread:$0]  (!%p1250_p2), %s1487_s2, 128, %s241_s8, [#allocation6]  }
  0x30   : > { %p978_p4 = pnand %p977_p13, %p971_p7 }
  0x32   : > { %981 = shalt.err (!%p978_p4)
}
  0x33   : > { %s1488_s0 = sld [smem:[#allocation20_spill]]  ;;  %s251_s27 = sand.u32 1, %s1130_s23  }
  0x34   : > { %s40_s7 = sadd.s32 1, %s1126_s22  ;;  %s1469_s8 = sand.u32 1, %s1118_s20  }
  0x35   : > { %p42_p3 = scmp.ge.s32.totalorder %s40_s7, 2  ;;  %s1277_s10 = sshll.u32 %s1469_s8, 7 }
  0x36   : > { %s1470_s11 = sshll.u32 %s1126_s22, 7  ;;  %s1490_s1 = sld [smem:[#allocation21_spill]] }
  0x37   : > { %s1514_s7 = smov (%p42_p3, %s40_s7), 0  ;;  %s252_s8 = scalar_lea.sflag [#allocation6], %s251_s27 }
  0x38   : > { %1489 = sst [smem:[#allocation18_spill]] %s1514_s7  ;;  %s77_s17 = ssub.s32 %s1126_s22, %s1514_s7 }
  0x39   : > { %854 = dma.hbm_to_vmem [thread:$0]  (!%p1250_p2), %s1488_s0, 128, %s228_s12, [#allocation3]  }
  0x3a   : > { %s255_s12 = scalar_lea.vmem [#allocation5], %s1277_s10  ;;  %p79_p7 = scmp.eq.s32.totalorder %s77_s17, 0 }
  0x3b   : > { %s264_s16 = sshll.u32 %s255_s12, 4  ;;  %p1492_p8 = scmp.ne.s32.totalorder %s1485_s9, 0  ;;  %s265_s16 = int_to_ptr.vmem [resolvable:$true] %s264_s16 }
  0x3c   : > { %s1287_s15 = scalar_lea.hbm %s1490_s1, %s1470_s11  ;;  %s995_s0 = scalar_lea.vmem %s265_s16, 2048 }
  0x3d   : > { %s1295_s25 = scalar_select %p79_p7, %s1118_s20, %s81_s26  }
  0x3e   : > { %p984_p9 = pneg %p1492_p8  ;;  %p996_p12 = scmp.ne.s32.totalorder %s265_s16, %s995_s0 }
  0x3f   : > { %1491 = sst [smem:[#allocation19_spill]] %s1295_s25  ;;  %s1134_s13 = smov [#allocation5]  }
  0x40   : > { %p998_p13 = pnand %p996_p12, %p984_p9  ;;  %s1000_s14 = sshll.u32 %s1134_s13, 4  ;;  %s1001_s14 = int_to_ptr.vmem [resolvable:$false] %s1000_s14 }
  0x41   : > { %s1002_s11 = scalar_lea.vmem %s1001_s14, 4096  ;;  %p1003_p2 = scmp.lt.s32.totalorder %s265_s16, %s1001_s14 }
  0x42   : > { %p999_p4 = pneg %p998_p13  ;;  %p1004_p6 = scmp.lt.s32.totalorder %s1002_s11, %s995_s0 }
  0x44   : > { %p1005_p11 = por %p1004_p6, %p1003_p2 }
  0x46   : > { %p1006_p1 = pnand %p1005_p11, %p999_p4 }
  0x48   : > { %1009 = shalt.err (!%p1006_p1)
}
  0x49   : > { %s1135_s26 = smov 256   ;;  %s1136_s27 = smov 128  }
  0x4a   : > { %s1137_s12 = smov 8   ;;  %s1493_s17 = sshll.u32 %s1126_s22, 7 }
  0x4b   : > { %861 = dma.hbm_to_vmem [thread:$0]  (!%p1492_p8), %s1287_s15, 2048, %s265_s16, %s252_s8, %s1135_s26, %s1136_s27, %s1137_s12  }
  0x4c   : > { %s283_s14 = scalar_lea.hbm %s1461_s3, %s1493_s17  ;;  %s278_s0 = scalar_lea.vmem [#allocation8], %s1277_s10 }
  0x4d   : > { %s284_s11 = sshll.u32 %s278_s0, 4  ;;  %s1494_s2 = sand.u32 1, %s1118_s20   ;;  %s285_s11 = int_to_ptr.vmem [resolvable:$true] %s284_s11 }
  0x4e   : > { %s275_s7 = scalar_lea.sflag [#allocation9], %s1494_s2  ;;  %s1023_s25 = scalar_lea.vmem %s285_s11, 2048 }
  0x4f   : > { %p1024_p0 = scmp.ne.s32.totalorder %s285_s11, %s1023_s25  ;;  %s1138_s23 = smov [#allocation8]  }
  0x50   : > { %s1028_s30 = sshll.u32 %s1138_s23, 4  ;;  %s1029_s30 = int_to_ptr.vmem [resolvable:$false] %s1028_s30 }
  0x51   : > { %p1026_p10 = pnand %p1024_p0, %p984_p9  ;;  %s1030_s8 = scalar_lea.vmem %s1029_s30, 4096 }
  0x52   : > { %p1031_p3 = scmp.lt.s32.totalorder %s285_s11, %s1029_s30  ;;  %p1032_p7 = scmp.lt.s32.totalorder %s1030_s8, %s1023_s25 }
  0x53   : > { %p1027_p5 = pneg %p1026_p10 }
  0x54   : > { %p1033_p12 = por %p1032_p7, %p1031_p3 }
  0x56   : > { %p1034_p13 = pnand %p1033_p12, %p1027_p5 }
  0x58   : > { %1037 = shalt.err (!%p1034_p13)
}
  0x59   : > { %864 = dma.hbm_to_vmem [thread:$0]  (!%p1492_p8), %s283_s14, 2048, %s285_s11, %s275_s7, %s1135_s26, %s1136_s27, %s1137_s12  }
  0x5a   : > { %p1495_p4 = scmp.ne.s32.totalorder %s1484_s6, 0 }
  0x5b   : > { %p1496_p2 = scmp.eq.s32.totalorder (!%p1495_p4), %s1203_s24, 0 }
  0x5c   : > { %302 = sbr.rel (%p1495_p4) target bundleno = 352 (0x160), region = 40 }
  0x61   : > { %1089 = dma.done.wait (%p1496_p2), [#allocation3], 128   ;;  %p1497_p9 = pmov %p1496_p2 }
  0x62   : > { %s308_s1 = sand.u32 1, %s1203_s24   ;;  %s1326_s2 = sand.u32 1, %s1114_s19  }
  0x63   : > { %1091 = vsyncadd (%p1497_p9), [#allocation3], 4294967168  ;;  %s724_s23 = sshll.u32 %s1326_s2, 7  ;;  %s309_s30 = scalar_lea.sflag [#allocation6], %s308_s1 }
  0x64   : > { %s1329_s9 = scalar_lea.vmem [#allocation5], %s724_s23  ;;  %p1498_p8 = scmp.ne.s32.totalorder %s1480_s28, 0 }
  0x66   : > { %1093 = dma.done.wait (%p1498_p8), %s309_s30, 2048  }
  0x67   : > { %1095 = vsyncadd (%p1498_p8), %s309_s30, 4294965248  ;;  %p1499_p6 = pmov %p1496_p2 }
  0x68   : > { %p1500_p11 = pmov %p1496_p2 }
  0x69   : > { %1097 = dma.done.wait (%p1499_p6), [#allocation6], 128  }
  0x6a   : > { %1099 = vsyncadd (%p1500_p11), [#allocation6], 4294967168  ;;  %s322_s6 = scalar_lea.sflag [#allocation9], %s1326_s2  ;;  %s1340_s7 = scalar_lea.vmem [#allocation8], %s724_s23 }
  0x6b   : > { %1101 = dma.done.wait (%p1498_p8), %s322_s6, 2048  }
  0x6c   : > { %1103 = vsyncadd (%p1498_p8), %s322_s6, 4294965248  ;;  %v1139_v0 = vmov 0.0   ;;  %vm1140_vm0 = vmmov 0   ;;  %v384_v1 = vld [vmem:[%s1340_s7 + $0x78] sm:$0xff]  ;;  %v383_v2 = vld [vmem:[%s1340_s7 + $0x70] sm:$0xff]  ;;  %p361_p1 = scmp.lt.s32.totalorder %s1122_s21, 1 }
  0x6d   : > { %767 = vmatprep.subr.mxu0 %v1139_v0  ;;  %802 = vmatprep.subr.mxu1 %v1139_v0  ;;  %v480_v3 = vld [vmem:[%s1329_s9 + $0x78] sm:$0xff]  ;;  %v382_v4 = vld [vmem:[%s1340_s7 + $0x68] sm:$0xff]  ;;  %v478_v6 = vld [vmem:[%s1329_s9 + $0x68] sm:$0xff]  ;;  %s727_s28 = sshll.u32 %s1326_s2, 3  ;;  %s730_s25 = sshll.u32 %s1122_s21, 7 }
  0x6e   : > { %799 = vmatprep.mubr.msk.f32.mxu0 %vm1140_vm0, %v1139_v0  ;;  %834 = vmatprep.mubr.msk.f32.mxu1 %vm1140_vm0, %v1139_v0  ;;  %v479_v5 = vld [vmem:[%s1329_s9 + $0x70] sm:$0xff]  ;;  %v381_v7 = vld [vmem:[%s1340_s7 + $0x60] sm:$0xff]  ;;  %v477_v8 = vld [vmem:[%s1329_s9 + $0x60] sm:$0xff]  ;;  %s362_s24 = scalar_select %p361_p1, %s1122_s21, 1 }
  0x6f   : > { %768 = vmatpush3.msra.mxu0 %v384_v1  ;;  %803 = vmatpush3.msra.mxu1 %v480_v3  ;;  %v380_v9 = vld [vmem:[%s1340_s7 + $0x58] sm:$0xff]  ;;  %v476_v10 = vld [vmem:[%s1329_s9 + $0x58] sm:$0xff]  ;;  %v475_v12 = vld [vmem:[%s1329_s9 + $0x50] sm:$0xff]  ;;  %s359_s26 = scalar_lea.vmem [#allocation10], %s727_s28  ;;  %s567_s13 = scalar_lea.hbm %s1463_s5, %s730_s25 }
  0x70   : > { %769 = vmatprep.subr.mxu0 %v1139_v0  ;;  %804 = vmatprep.subr.mxu1 %v1139_v0  ;;  %v379_v11 = vld [vmem:[%s1340_s7 + $0x50] sm:$0xff]  ;;  %v378_v13 = vld [vmem:[%s1340_s7 + $0x48] sm:$0xff]  ;;  %v474_v14 = vld [vmem:[%s1329_s9 + $0x48] sm:$0xff]  ;;  %s363_s16 = scalar_lea.vmem %s1462_s4, %s362_s24  ;;  %s569_s27 = sshll.u32 %s359_s26, 4  ;;  %s570_s27 = int_to_ptr.vmem [resolvable:$true] %s569_s27 }
  0x71   : > { %770 = vmatpush3.msra.mxu0 %v383_v2  ;;  %805 = vmatpush3.msra.mxu1 %v479_v5  ;;  %v377_v15 = vld [vmem:[%s1340_s7 + $0x40] sm:$0xff]  ;;  %v473_v16 = vld [vmem:[%s1329_s9 + $0x40] sm:$0xff]  ;;  %v472_v18 = vld [vmem:[%s1329_s9 + $0x38] sm:$0xff]  ;;  %s554_s14 = scalar_lea.sflag [#allocation4], %s1326_s2  ;;  %s1038_s0 = scalar_lea.vmem %s570_s27, 128 }
  0x72   : > { %771 = vmatprep.subr.mxu0 %v1139_v0  ;;  %806 = vmatprep.subr.mxu1 %v1139_v0  ;;  %v376_v17 = vld [vmem:[%s1340_s7 + $0x38] sm:$0xff]  ;;  %v375_v19 = vld [vmem:[%s1340_s7 + $0x30] sm:$0xff]  ;;  %v471_v20 = vld [vmem:[%s1329_s9 + $0x30] sm:$0xff]  ;;  %p1039_p0 = scmp.ne.s32.totalorder %s570_s27, %s1038_s0  ;;  %p1501_p10 = scmp.ne.s32.totalorder %s1481_s29, 0 }
  0x73   : > { %772 = vmatpush3.msra.mxu0 %v382_v4  ;;  %807 = vmatpush3.msra.mxu1 %v478_v6  ;;  %v374_v21 = vld [vmem:[%s1340_s7 + $0x28] sm:$0xff]  ;;  %v470_v22 = vld [vmem:[%s1329_s9 + $0x28] sm:$0xff]  ;;  %v469_v24 = vld [vmem:[%s1329_s9 + $0x20] sm:$0xff]  ;;  %s1141_s21 = smov [#allocation10]  }
  0x74   : > { %773 = vmatprep.subr.mxu0 %v1139_v0  ;;  %808 = vmatprep.subr.mxu1 %v1139_v0  ;;  %v373_v23 = vld [vmem:[%s1340_s7 + $0x20] sm:$0xff]  ;;  %v372_v25 = vld [vmem:[%s1340_s7 + $0x18] sm:$0xff]  ;;  %v468_v26 = vld [vmem:[%s1329_s9 + $0x18] sm:$0xff]  ;;  %p1040_p5 = pnand %p1039_p0, %p1501_p10  ;;  %s1042_s11 = sshll.u32 %s1141_s21, 4  ;;  %s1043_s11 = int_to_ptr.vmem [resolvable:$false] %s1042_s11 }
  0x75   : > { %774 = vmatpush3.msra.mxu0 %v381_v7  ;;  %809 = vmatpush3.msra.mxu1 %v477_v8  ;;  %v371_v27 = vld [vmem:[%s1340_s7 + $0x10] sm:$0xff]  ;;  %v467_v28 = vld [vmem:[%s1329_s9 + $0x10] sm:$0xff]  ;;  %v466_v30 = vld [vmem:[%s1329_s9 + $0x8] sm:$0xff]  ;;  %s1044_s8 = scalar_lea.vmem %s1043_s11, 256  ;;  %p1045_p7 = scmp.lt.s32.totalorder %s570_s27, %s1043_s11 }
  0x76   : > { %775 = vmatprep.subr.mxu0 %v1139_v0  ;;  %810 = vmatprep.subr.mxu1 %v1139_v0  ;;  %v370_v29 = vld [vmem:[%s1340_s7 + $0x8] sm:$0xff]  ;;  %v369_v31 = vld [vmem:[%s1340_s7] sm:$0xff]  ;;  %v368_v32 = vld [vmem:[#allocation7] sm:$0xff]  ;;  %p1041_p3 = pneg %p1040_p5  ;;  %p1046_p12 = scmp.lt.s32.totalorder %s1044_s8, %s1038_s0 }
  0x77   : > { %776 = vmatpush3.msra.mxu0 %v380_v9  ;;  %811 = vmatpush3.msra.mxu1 %v476_v10  ;;  %v465_v33 = vld [vmem:[%s1329_s9] sm:$0xff]  ;;  %v464_v34 = vld [vmem:[#allocation2] sm:$0xff] }
  0x78   : > { %777 = vmatprep.subr.mxu0 %v1139_v0  ;;  %812 = vmatprep.subr.mxu1 %v1139_v0  ;;  %v728_v35 = vld [vmem:[%s363_s16] ss:$0 sm:$0xff]  ;;  %p1047_p13 = por %p1046_p12, %p1045_p7 }
  0x79   : > { %778 = vmatpush3.msra.mxu0 %v379_v11  ;;  %813 = vmatpush3.msra.mxu1 %v475_v12 }
  0x7a   : > { %779 = vmatprep.subr.mxu0 %v1139_v0  ;;  %814 = vmatprep.subr.mxu1 %v1139_v0  ;;  %p1048_p4 = pnand %p1047_p13, %p1041_p3 }
  0x7b   : > { %780 = vmatpush3.msra.mxu0 %v378_v13  ;;  %815 = vmatpush3.msra.mxu1 %v474_v14 }
  0x7c   : > { %781 = vmatprep.subr.mxu0 %v1139_v0  ;;  %816 = vmatprep.subr.mxu1 %v1139_v0 }
  0x7d   : > { %782 = vmatpush3.msra.mxu0 %v377_v15  ;;  %817 = vmatpush3.msra.mxu1 %v473_v16 }
  0x7e   : > { %783 = vmatprep.subr.mxu0 %v1139_v0  ;;  %818 = vmatprep.subr.mxu1 %v1139_v0 }
  0x7f   : > { %784 = vmatpush3.msra.mxu0 %v376_v17  ;;  %819 = vmatpush3.msra.mxu1 %v472_v18 }
  0x80   : > { %785 = vmatprep.subr.mxu0 %v1139_v0  ;;  %820 = vmatprep.subr.mxu1 %v1139_v0 }
  0x81   : > { %786 = vmatpush3.msra.mxu0 %v375_v19  ;;  %821 = vmatpush3.msra.mxu1 %v471_v20 }
  0x82   : > { %787 = vmatprep.subr.mxu0 %v1139_v0  ;;  %822 = vmatprep.subr.mxu1 %v1139_v0 }
  0x83   : > { %788 = vmatpush3.msra.mxu0 %v374_v21  ;;  %823 = vmatpush3.msra.mxu1 %v470_v22 }
  0x84   : > { %789 = vmatprep.subr.mxu0 %v1139_v0  ;;  %824 = vmatprep.subr.mxu1 %v1139_v0 }
  0x85   : > { %790 = vmatpush3.msra.mxu0 %v373_v23  ;;  %825 = vmatpush3.msra.mxu1 %v469_v24 }
  0x86   : > { %791 = vmatprep.subr.mxu0 %v1139_v0  ;;  %826 = vmatprep.subr.mxu1 %v1139_v0 }
  0x87   : > { %792 = vmatpush3.msra.mxu0 %v372_v25  ;;  %827 = vmatpush3.msra.mxu1 %v468_v26 }
  0x88   : > { %793 = vmatprep.subr.mxu0 %v1139_v0  ;;  %828 = vmatprep.subr.mxu1 %v1139_v0 }
  0x89   : > { %794 = vmatpush3.msra.mxu0 %v371_v27  ;;  %829 = vmatpush3.msra.mxu1 %v467_v28 }
  0x8a   : > { %795 = vmatprep.subr.mxu0 %v1139_v0  ;;  %830 = vmatprep.subr.mxu1 %v1139_v0 }
  0x8b   : > { %796 = vmatpush3.msra.mxu0 %v370_v29  ;;  %831 = vmatpush3.msra.mxu1 %v466_v30 }
  0x8c   : > { %797 = vmatprep.subr.mxu0 %v1139_v0  ;;  %832 = vmatprep.subr.mxu1 %v1139_v0 }
  0x8d   : > { %798 = vmatpush3.msra.mxu0 %v369_v31  ;;  %833 = vmatpush3.msra.mxu1 %v465_v33 }
  0x8e   : > { %800 = vmatmul.mubr.f32.vlgmr.msra.gmra.mxu0 %v368_v32  ;;  %835 = vmatmul.mubr.f32.vlgmr.msra.gmra.mxu1 %v464_v34 }
 0x14e   : > { %v458_v36 = vpop.f32.mrf.mxu0  ;;  %v547_v38 = vpop.f32.mrf.mxu1 }
 0x14f   : > { %v459_v37 = vadd.f32 %v728_v35, %v458_v36 }
 0x150   : > { %v801_v39 = vpop.f32.mrf.mxu0  ;;  %v836_v41 = vpop.f32.mrf.mxu1 }
 0x151   : > { %v551_v40 = vadd.f32 %v547_v38, %v459_v37 }
 0x153   : > { %552 = vst [vmem:[%s359_s26] sm:$0xff] %v551_v40 }
 0x154   : > { %1051 = shalt.err (!%p1048_p4)
}
 0x155   : > { %s1052_s1 = scalar_lea.hbm %s567_s13, 128  ;;  %s1056_s30 = scalar_lea.hbm %s1463_s5, 256 }
 0x156   : > { %p1053_p2 = scmp.ne.s32.totalorder %s567_s13, %s1052_s1  ;;  %p1057_p6 = scmp.lt.s32.totalorder %s567_s13, %s1463_s5 }
 0x157   : > { %p1058_p11 = scmp.lt.s32.totalorder %s1056_s30, %s1052_s1 }
 0x158   : > { %p1054_p9 = pnand %p1053_p2, %p1501_p10 }
 0x159   : > { %p1059_p1 = por %p1058_p11, %p1057_p6 }
 0x15a   : > { %p1055_p8 = pneg %p1054_p9 }
 0x15c   : > { %p1060_p0 = pnand %p1059_p1, %p1055_p8 }
 0x15e   : > { %1063 = shalt.err (!%p1060_p0)
}
 0x15f   : > { %849 = dma.vmem_to_hbm [thread:$0]  (%p1501_p10), %s570_s27, 128, %s567_s13, %s554_s14  }
 0x160 PF: > { %s1502_s7 = sld [smem:[#allocation17_spill]]  ;;  %s581_s28 = sand.u32 1, %s1110_s18  }
 0x161   : > { %s1503_s24 = sld [smem:[#allocation16_spill]]  ;;  %s582_s10 = scalar_lea.sflag [#allocation4], %s581_s28 }
 0x166   : > { %p1504_p5 = scmp.ne.s32.totalorder %s1502_s7, 0 }
 0x167   : > { %p1505_p3 = scmp.ge.s32.totalorder %s1503_s24, 2 }
 0x169   : > { %p866_p7 = pnand %p1505_p3, %p1504_p5 }
 0x16b   : > { %p867_p12 = pneg %p866_p7 }
 0x16d   : > { %1105 = dma.done.wait (%p867_p12), %s582_s10, 128  }
 0x16e   : > { %1107 = vsyncadd (%p867_p12), %s582_s10, 4294967168  ;;  %s25_s23 = sadd.s32 1, %s1503_s24   ;;  %s1506_s15 = sld [smem:[#allocation19_spill]] }
 0x16f   : > { %p22_p13 = scmp.ge.s32.totalorder %s25_s23, 4   ;;  %s1507_s29 = sld [smem:[#allocation18_spill]] }
 0x170   : > { %s1508_s18 = smov %s1114_s19  ;;  %s1509_s19 = smov %s1118_s20 }
 0x171   : > { %s1511_s21 = smov %s1126_s22  ;;  %24 = sbr.rel (!%p22_p13) target bundleno = 13 (0xd), region = 116 }
 0x174   : > { %s1510_s20 = smov %s1506_s15 }
 0x175   : > { %s1512_s22 = smov %s1507_s29 }
 0x176   :  { %587 = vsyncpa [#allocation3], 1 }
 0x177   :  { %589 = vsyncpa [#allocation3 + $0x1], 1 }
 0x178   :  { %590 = vsyncpa [#allocation6], 1 }
 0x179   :  { %592 = vsyncpa [#allocation6 + $0x1], 1 }
 0x17a   :  { %593 = vsyncpa [#allocation9], 1 }
 0x17b   :  { %595 = vsyncpa [#allocation9 + $0x1], 1 }
 0x17c   :  { %596 = vsyncpa [#allocation4], 1 }
 0x17d   :  { %598 = vsyncpa [#allocation4 + $0x1], 1 }

</bundles_post_ra>
